<compile_context>
chip_gen: v6e
topology: v6e:2x2x1
jax: 0.10.0
libtpu: 0.0.40
codegen_flags: <defaults>
</compile_context>

<pallas_src>
import math

import numpy as np
import jax
import jax.numpy as jnp
from jax import lax
from jax.experimental import pallas as pl
from jax.experimental.pallas import tpu as pltpu

DECAY = 0.01   # GradVac __init__ arg; does not affect the output of one forward call.
_LANE = 128


def _coeff_kernel(perm_ref, pg_ref, c_ref):
    """Single invocation: sum per-group partial Grams, run the sequential GradVac
    decision recursion, and emit the (K, K) coefficient matrix C.

    perm_ref : SMEM (K, K-1) int32  -- per-task visitation order (scalar prefetch)
    pg_ref   : VMEM (num_groups, K, K) f32 -- partial Gram matrices
    c_ref    : VMEM (K, K) f32      -- output coefficient matrix
    """
    G = jnp.sum(pg_ref[...].astype(jnp.float32), axis=0)          # full Gram (K, K)
    K = G.shape[0]
    steps = perm_ref.shape[1]                                      # K - 1
    lane_ids = lax.broadcasted_iota(jnp.int32, (1, K), 1)          # (1, K)
    sub_ids = lax.broadcasted_iota(jnp.int32, (K, 1), 0)           # (K, 1)
    row_ids = lax.broadcasted_iota(jnp.int32, (K, K), 0)
    col_ids = lax.broadcasted_iota(jnp.int32, (K, K), 1)
    # diag_row[0, j] = G[j, j] = ||grad_j||^2
    diag_row = jnp.sum(jnp.where(row_ids == col_ids, G, 0.0), axis=0, keepdims=True)

    # Sequential GradVac recursion, fully unrolled (K is small and static).
    # Per-task state:  c  = coefficients of current grad_i over original grads (1, K)
    #                  dv = c @ G  (dv[0, j] = <current grad_i, grad_j>)
    #                  q  = ||current grad_i||^2   (maintained incrementally)
    # TODO(synk): for K >= ~16 switch to lax.fori_loop(unroll=True) + pl.ds row
    # slices to bound trace size / serial XLU work; negligible at K <= 8.
    for i in range(K):
        onehot_i = (lane_ids == i).astype(jnp.float32)
        c = onehot_i
        dv = G[i:i + 1, :]
        q = jnp.sum(dv * onehot_i)
        for step in range(steps):
            j = perm_ref[i, step]
            onehot_j = (lane_ids == j).astype(jnp.float32)          # (1, K)
            colhot_j = (sub_ids == j).astype(jnp.float32)           # (K, 1)
            dot_uv = jnp.sum(dv * onehot_j)                         # u . v_j
            vv = jnp.sum(diag_row * onehot_j)                       # ||v_j||^2
            norm_u = jnp.sqrt(jnp.maximum(q, 0.0))
            norm_v = jnp.sqrt(vv)
            # torch.cosine_similarity(dim=0) clamps each norm at 1e-8.
            cos = dot_uv / (jnp.maximum(norm_u, 1e-8) * jnp.maximum(norm_v, 1e-8))
            # vac_projection with pre_ema == 0.
            scale = -norm_u * cos / jnp.maximum(norm_v, 1e-15)
            scale = jnp.where(cos < 0.0, scale, jnp.float32(0.0))
            g_row_j = jnp.sum(G * colhot_j, axis=0, keepdims=True)  # G[j, :]
            q = q + 2.0 * scale * dot_uv + scale * scale * vv
            dv = dv + scale * g_row_j
            c = c + scale * onehot_j
        c_ref[i:i + 1, :] = c


def _combine_kernel(c_ref, g_ref, o_ref):
    """out_tile = C @ grad_tile on the VPU (exact f32; MXU bypassed for tiny K)."""
    K = g_ref.shape[0]
    c = c_ref[...]                                   # (K, K) f32
    g = g_ref[...]                                   # (K, block_d)
    acc = c[:, 0:1] * g[0:1, :].astype(jnp.float32)
    for j in range(1, K):
        acc = acc + c[:, j:j + 1] * g[j:j + 1, :].astype(jnp.float32)
    o_ref[...] = acc.astype(o_ref.dtype)


def gradvac_forward(grads, perms, *, core_groups=2, max_block_d=None, in_place=False):
    """grads: (K, *size) jnp array.  perms: (K, K-1) int array of per-task j-orders.

    core_groups : leading "parallel" grid axis for the Gram pass so the reduction
                  uses both TensorCores on v7x (harmless, sequential, on v5e/v6e).
    max_block_d : optional cap on the D-tile (testing / tuning).
    in_place    : alias the output onto the flat grads buffer (only useful when
                  the caller donates grads; otherwise XLA inserts a copy).
    """
    K = grads.shape[0]
    size = grads.shape[1:]
    D = int(np.prod(size)) if size else 1
    if K == 1:
        return grads  # nothing to project against

    dtype = grads.dtype
    itemsize = jnp.dtype(dtype).itemsize
    flat = grads.reshape(K, D)
    perms_i32 = jnp.asarray(perms, dtype=jnp.int32)

    # ---- tile selection with real (sublane-padded, double-buffered) VMEM math ----
    K_pad = -(-K // 8) * 8
    try:
        vmem_cap = int(pltpu.get_tpu_info().vmem_capacity_bytes)
    except Exception:  # interpret mode / unknown chip: assume the smallest (v7x) VMEM
        vmem_cap = 64 * 1024 * 1024
    vmem_budget = min((vmem_cap * 3) // 4, 96 * 1024 * 1024)
    # Combine pass is the VMEM peak: 2 double-buffered input tiles + 2 output tiles
    # (each sublane-padded to K_pad rows) + headroom for ~4 f32 compute temporaries.
    per_lane_col = K_pad * (4 * itemsize + 4 * 4)
    block_d_cap = max(_LANE, (vmem_budget // per_lane_col) // _LANE * _LANE)
    if max_block_d is not None:
        block_d_cap = min(block_d_cap, max(_LANE, (int(max_block_d) // _LANE) * _LANE))
    block_d = D if D <= block_d_cap else block_d_cap
    num_tiles = -(-D // block_d)

    num_groups = max(1, min(int(core_groups), num_tiles))
    tiles_per_group = -(-num_tiles // num_groups)
    lane_mask_needed = (D % block_d) != 0                               # partial tail tile
    gate_needed = (not lane_mask_needed) and \
                  (num_groups * tiles_per_group != num_tiles)           # overflow steps only
    vmem_limit = int(min(vmem_cap, vmem_budget + (8 << 20)))

    # ---------------- pass 1: per-group partial Gram matrices (VPU) ----------------
    def gram_kernel(g_ref, pg_ref, acc_ref):
        t = pl.program_id(1)

        @pl.when(t == 0)
        def _():
            acc_ref[...] = jnp.zeros_like(acc_ref)

        a = g_ref[...].astype(jnp.float32)                   # (K, block_d)
        gt = pl.program_id(0) * tiles_per_group + t          # global tile index
        if lane_mask_needed:
            # Zero lanes past D: covers the tail tile and any duplicated overflow reads.
            lane = lax.broadcasted_iota(jnp.int32, a.shape, 1)
            a = jnp.where(lane < D - gt * block_d, a, 0.0)
        # Gram update on the VPU: upd[:, j] = sum_d a[:, d] * a[j, d].
        cols = [jnp.sum(a * a[j:j + 1, :], axis=1, keepdims=True) for j in range(K)]
        upd = jnp.concatenate(cols, axis=1)                  # (K, K)
        if gate_needed:
            upd = upd * (gt < num_tiles).astype(jnp.float32)
        acc_ref[...] += upd

        @pl.when(t == pl.num_programs(1) - 1)
        def _():
            pg_ref[0] = acc_ref[...]

    if num_groups * tiles_per_group == num_tiles:
        def g_in_map(gi, ti):
            return (0, gi * tiles_per_group + ti)
    else:
        def g_in_map(gi, ti):
            # Clamp overflow steps onto the last real tile; their contribution is masked.
            return (0, jnp.minimum(gi * tiles_per_group + ti, num_tiles - 1))

    partial_grams = pl.pallas_call(
        gram_kernel,
        out_shape=jax.ShapeDtypeStruct((num_groups, K, K), jnp.float32),
        grid=(num_groups, tiles_per_group),
        in_specs=[pl.BlockSpec((K, block_d), g_in_map)],
        out_specs=pl.BlockSpec((1, K, K), lambda gi, ti: (gi, 0, 0)),
        scratch_shapes=[pltpu.VMEM((K, K), jnp.float32)],
        compiler_params=pltpu.CompilerParams(
            dimension_semantics=("parallel", "arbitrary"),
            vmem_limit_bytes=vmem_limit),
    )(flat)

    # ---------------- pass 2: tiny coefficient kernel (GradVac recursion) ----------
    c_mat = pl.pallas_call(
        _coeff_kernel,
        out_shape=jax.ShapeDtypeStruct((K, K), jnp.float32),
        grid_spec=pltpu.PrefetchScalarGridSpec(
            num_scalar_prefetch=1,
            grid=(1,),
            in_specs=[pl.BlockSpec((num_groups, K, K), lambda n, perm: (0, 0, 0))],
            out_specs=pl.BlockSpec((K, K), lambda n, perm: (0, 0)),
        ),
        compiler_params=pltpu.CompilerParams(
            dimension_semantics=("arbitrary",)),
    )(perms_i32, partial_grams)

    # ---------------- pass 3: new_grads = C @ grads, tiled over D -------------------
    alias = {1: 0} if in_place else {}
    new_flat = pl.pallas_call(
        _combine_kernel,
        out_shape=jax.ShapeDtypeStruct((K, D), dtype),
        grid=(num_tiles,),
        in_specs=[pl.BlockSpec((K, K), lambda ti: (0, 0)),
                  pl.BlockSpec((K, block_d), lambda ti: (0, ti))],
        out_specs=pl.BlockSpec((K, block_d), lambda ti: (0, ti)),
        input_output_aliases=alias,
        compiler_params=pltpu.CompilerParams(
            dimension_semantics=("parallel",),
            vmem_limit_bytes=vmem_limit),
    )(c_mat, flat)

    return new_flat.reshape(grads.shape)


def make_perms(num_tasks, seed=0):
    # TODO(synk): the original module uses np.random.permutation with global RNG state
    # inside forward(); we fix a seed and precompute the per-task visitation order
    # (excluding i) on host.  Persistent cross-call EMA state (and hence `decay`) has
    # no effect on a single forward call and is intentionally not modeled.
    rng = np.random.RandomState(seed)
    perms = []
    for i in range(num_tasks):
        p = rng.permutation(num_tasks)
        perms.append([int(j) for j in p if int(j) != i])
    return np.asarray(perms, dtype=np.int32)


def gradvac_reference(grads_np, perms, decay):
    """Pure-numpy transcription of the PyTorch forward (same visitation order)."""
    grads_np = np.asarray(grads_np, dtype=np.float32)
    K = grads_np.shape[0]
    size = grads_np.shape[1:]
    gl = [g.reshape(-1) for g in grads_np]
    ema = [[0.0 for _ in range(K)] for _ in range(K)]
    new = []
    for i in range(K):
        gi = gl[i].copy()
        for j in perms[i]:
            gj = gl[j]
            nu = math.sqrt(float(np.dot(gi, gi)))
            nv = math.sqrt(float(np.dot(gj, gj)))
            cos = float(np.dot(gi, gj)) / (max(nu, 1e-8) * max(nv, 1e-8))
            if cos < ema[i][j]:
                pre = ema[i][j]
                numer = nu * (pre * math.sqrt(max(1.0 - cos * cos, 0.0))
                              - cos * math.sqrt(1.0 - pre * pre))
                denom = nv * math.sqrt(1.0 - pre * pre)
                gi = gi + numer / max(denom, 1e-15) * gj
            ema[i][j] = (1.0 - decay) * ema[i][j] + decay * cos
        new.append(gi.reshape(size))
    return np.stack(new, axis=0)


if __name__ == "__main__":
    key = jax.random.PRNGKey(0)
    k1, k2 = jax.random.split(key)

    # K=3 tasks, each gradient shaped like a small conv-weight grad (4,16,16) -> D=1024.
    grads = jax.random.normal(k1, (3, 4, 16, 16), dtype=jnp.float32)
    perms = make_perms(grads.shape[0], seed=0)
    out = jax.block_until_ready(gradvac_forward(grads, perms))
    ref = gradvac_reference(np.asarray(grads), perms, DECAY)
    np.testing.assert_allclose(np.asarray(out), ref, rtol=1e-4, atol=1e-5)
    assert out.shape == grads.shape and out.dtype == grads.dtype

    # Extra check exercising the multi-tile / multi-group path: K=4, D=580 (not a
    # multiple of 128) with block_d forced to 128 -> partial tail tile, clamped
    # overflow grid steps, and the two-group Gram split.
    grads2 = jax.random.normal(k2, (4, 580), dtype=jnp.float32)
    perms2 = make_perms(grads2.shape[0], seed=1)
    out2 = jax.block_until_ready(gradvac_forward(grads2, perms2, max_block_d=128))
    ref2 = gradvac_reference(np.asarray(grads2), perms2, DECAY)
    np.testing.assert_allclose(np.asarray(out2), ref2, rtol=1e-4, atol=1e-5)
    assert out2.shape == grads2.shape and out2.dtype == grads2.dtype

    print("KERNEL_OK")
</pallas_src>

<mosaic_0001>
module attributes {stable_mosaic.version = 11 : i64} {
  func.func @gram_kernel(%arg0: i32, %arg1: i32, %arg2: memref<3x1024xf32, #tpu.memory_space<vmem>>, %arg3: memref<1x3x3xf32, #tpu.memory_space<vmem>>, %arg4: memref<3x3xf32, #tpu.memory_space<vmem>>) attributes {dimension_semantics = [#tpu.dimension_semantics<parallel>, #tpu.dimension_semantics<arbitrary>], iteration_bounds = array<i64: 1, 1>, scalar_prefetch = 0 : i64, scratch_operands = 1 : i64, tpu.core_type = #tpu.core_type<tc>, window_params = [{transform_indices = @transform_0, window_bounds = array<i64: 3, 1024>}, {transform_indices = @transform_1, window_bounds = array<i64: 1, 3, 3>}]} {
    %c0_i32 = arith.constant 0 : i32
    %0 = arith.cmpi eq, %arg1, %c0_i32 : i32
    %1 = arith.extui %0 : i1 to i32
    %c0_i32_0 = arith.constant 0 : i32
    %2 = arith.cmpi ne, %1, %c0_i32_0 : i32
    scf.if %2 {
      %cst_10 = arith.constant 0.000000e+00 : f32
      %26 = vector.broadcast %cst_10 : f32 to vector<3x3xf32>
      %c0_11 = arith.constant 0 : index
      %c0_12 = arith.constant 0 : index
      %27 = vector.load %arg4[%c0_11, %c0_12] : memref<3x3xf32, #tpu.memory_space<vmem>>, vector<3x3xf32>
      tpu.vector_store %arg4[%c0_11, %c0_12], %26 {strides = array<i32>} : memref<3x3xf32, #tpu.memory_space<vmem>>, vector<3x3xf32>,
    } else {
    }
    %c0 = arith.constant 0 : index
    %c0_1 = arith.constant 0 : index
    %3 = vector.load %arg2[%c0, %c0_1] : memref<3x1024xf32, #tpu.memory_space<vmem>>, vector<3x1024xf32>
    %4 = vector.extract_strided_slice %3 {offsets = [0, 0], sizes = [1, 1024], strides = [1, 1]} : vector<3x1024xf32> to vector<1x1024xf32>
    %5 = vector.broadcast %4 : vector<1x1024xf32> to vector<3x1024xf32>
    %6 = arith.mulf %3, %5 : vector<3x1024xf32>
    %cst = arith.constant dense<0.000000e+00> : vector<3xf32>
    %7 = vector.multi_reduction <add>, %6, %cst [1] : vector<3x1024xf32> to vector<3xf32>
    %8 = vector.shape_cast %7 : vector<3xf32> to vector<3x1xf32>
    %9 = vector.extract_strided_slice %3 {offsets = [1, 0], sizes = [1, 1024], strides = [1, 1]} : vector<3x1024xf32> to vector<1x1024xf32>
    %10 = vector.broadcast %9 : vector<1x1024xf32> to vector<3x1024xf32>
    %11 = arith.mulf %3, %10 : vector<3x1024xf32>
    %cst_2 = arith.constant dense<0.000000e+00> : vector<3xf32>
    %12 = vector.multi_reduction <add>, %11, %cst_2 [1] : vector<3x1024xf32> to vector<3xf32>
    %13 = vector.shape_cast %12 : vector<3xf32> to vector<3x1xf32>
    %14 = vector.extract_strided_slice %3 {offsets = [2, 0], sizes = [1, 1024], strides = [1, 1]} : vector<3x1024xf32> to vector<1x1024xf32>
    %15 = vector.broadcast %14 : vector<1x1024xf32> to vector<3x1024xf32>
    %16 = arith.mulf %3, %15 : vector<3x1024xf32>
    %cst_3 = arith.constant dense<0.000000e+00> : vector<3xf32>
    %17 = vector.multi_reduction <add>, %16, %cst_3 [1] : vector<3x1024xf32> to vector<3xf32>
    %18 = vector.shape_cast %17 : vector<3xf32> to vector<3x1xf32>
    %19 = tpu.concatenate %8, %13, %18 in 1 : vector<3x1xf32>, vector<3x1xf32>, vector<3x1xf32> -> vector<3x3xf32>
    %c0_4 = arith.constant 0 : index
    %c0_5 = arith.constant 0 : index
    %20 = vector.load %arg4[%c0_4, %c0_5] : memref<3x3xf32, #tpu.memory_space<vmem>>, vector<3x3xf32>
    %21 = arith.addf %20, %19 : vector<3x3xf32>
    %c0_6 = arith.constant 0 : index
    %c0_7 = arith.constant 0 : index
    %22 = vector.load %arg4[%c0_6, %c0_7] : memref<3x3xf32, #tpu.memory_space<vmem>>, vector<3x3xf32>
    tpu.vector_store %arg4[%c0_6, %c0_7], %21 {strides = array<i32>} : memref<3x3xf32, #tpu.memory_space<vmem>>, vector<3x3xf32>,
    %c0_i32_8 = arith.constant 0 : i32
    %23 = arith.cmpi eq, %arg1, %c0_i32_8 : i32
    %24 = arith.extui %23 : i1 to i32
    %c0_i32_9 = arith.constant 0 : i32
    %25 = arith.cmpi ne, %24, %c0_i32_9 : i32
    scf.if %25 {
      %c0_10 = arith.constant 0 : index
      %c0_11 = arith.constant 0 : index
      %26 = vector.load %arg4[%c0_10, %c0_11] : memref<3x3xf32, #tpu.memory_space<vmem>>, vector<3x3xf32>
      %c0_12 = arith.constant 0 : index
      %c0_13 = arith.constant 0 : index
      %c0_14 = arith.constant 0 : index
      %27 = vector.load %arg3[%c0_12, %c0_13, %c0_14] : memref<1x3x3xf32, #tpu.memory_space<vmem>>, vector<1x3x3xf32>
      %28 = vector.shape_cast %27 : vector<1x3x3xf32> to vector<3x3xf32>
      %29 = vector.shape_cast %26 : vector<3x3xf32> to vector<1x3x3xf32>
      tpu.vector_store %arg3[%c0_12, %c0_13, %c0_14], %29 {strides = array<i32>} : memref<1x3x3xf32, #tpu.memory_space<vmem>>, vector<1x3x3xf32>,
    } else {
    }
    return
  }
  func.func @transform_0(%arg0: i32, %arg1: i32) -> (i32, i32) {
    %c1_i32 = arith.constant 1 : i32
    %0 = arith.muli %arg0, %c1_i32 : i32
    %1 = arith.addi %0, %arg1 : i32
    %c0_i32 = arith.constant 0 : i32
    %c0_i32_0 = arith.constant 0 : i32
    return %c0_i32, %1 : i32, i32
  }
  func.func @transform_1(%arg0: i32, %arg1: i32) -> (i32, i32, i32) {
    %c0_i32 = arith.constant 0 : i32
    %c0_i32_0 = arith.constant 0 : i32
    %c0_i32_1 = arith.constant 0 : i32
    return %arg0, %c0_i32, %c0_i32_0 : i32, i32, i32
  }
}

</mosaic_0001>

<bundles_post_ra>
// kernel: tpu_custom_call.1
= control target key start
LH: loop header
LB: loop body
LE: loop exit
PB: predicated region body
PF: predicated region fallthrough
CT: control target
= control target key end

     0   :  { %6 = vsyncpa [#allocation4], 0  ;;  %s446_s6 = smov [#allocation3]   ;;  %s532_s0 = inlined_call_operand.hbm [shape: f32[3,1024], index: 0, kind: input, shape index: {}]   ;;  %s533_s1 = inlined_call_operand.vmem [shape: f32[1,3,3], index: 1, kind: output, shape index: {}]  }
   0x1   :  { %s17_s7 = sshll.u32 %s446_s6, 4  ;;  %s18_s7 = int_to_ptr.vmem [resolvable:$true] %s17_s7 }
   0x2   :  { %s432_s8 = scalar_lea.vmem %s18_s7, 512  ;;  %p437_p1 = scmp.lt.s32.totalorder %s18_s7, %s18_s7 }
   0x3   :  { %p433_p0 = scmp.ne.s32.totalorder %s18_s7, %s432_s8  ;;  %p438_p2 = scmp.lt.s32.totalorder %s432_s8, %s432_s8 }
   0x5   :  { %p439_p3 = por %p438_p2, %p437_p1 }
   0x7   :  { %p440_p4 = pnand %p439_p3, %p433_p0 }
   0x9   :  { %443 = shalt.err (!%p440_p4)
}
   0xa   :  { %20 = dma.hbm_to_vmem [thread:$0]  %s532_s0, 512, %s18_s7, [#allocation4]  }
   0xb   :  { %444 = dma.done.wait [#allocation4], 512  }
   0xc   :  { %445 = vsyncadd [#allocation4], 4294966784  ;;  %v40_v0 = vlaneseq  ;;  %v461_v6 = vld [vmem:[#allocation3] sm:$0x77]  ;;  %v463_v7 = vld [vmem:[#allocation3 + $0x8] sm:$0x77] }
   0xd   :  { %v465_v8 = vld [vmem:[#allocation3 + $0x10] sm:$0x77]  ;;  %v467_v9 = vld [vmem:[#allocation3 + $0x18] sm:$0x77]  ;;  %vm144_vm0 = vcmask 1042432   ;;  %vm30_vm1 = vcmask 18432  }
   0xe   :  { %v41_v1 = vshrl.u32 %v40_v0, 7  ;;  %vm404_vm2 = vcmask 7168   ;;  %vm406_vm3 = vcmask 15360  }
  0x10   :  { %v42_v2 = vsub.s32 0, %v41_v1  ;;  %v46_v3 = vsub.s32 4, %v41_v1  ;;  %v164_v4 = vsub.s32 1, %v41_v1  ;;  %v168_v5 = vsub.s32 5, %v41_v1 }
  0x11   :  { %v285_v45 = vsub.s32 2, %v41_v1  ;;  %v289_v47 = vsub.s32 6, %v41_v1 }
  0x12   :  { %v43_v10 = vrot.slane %v461_v6, %v42_v2  ;;  %v47_v11 = vrot.slane %v461_v6, %v46_v3  ;;  %v51_v12 = vrot.slane %v463_v7, %v42_v2  ;;  %v55_v13 = vrot.slane %v463_v7, %v46_v3 }
  0x13   :  { %v59_v14 = vrot.slane %v465_v8, %v42_v2  ;;  %v63_v15 = vrot.slane %v465_v8, %v46_v3  ;;  %v67_v16 = vrot.slane %v467_v9, %v42_v2  ;;  %v71_v17 = vrot.slane %v467_v9, %v46_v3 }
  0x14   :  { %v83_v18 = vrot.slane %v43_v10, %v42_v2  ;;  %v87_v19 = vrot.slane %v47_v11, %v42_v2  ;;  %v91_v20 = vrot.slane %v51_v12, %v42_v2  ;;  %v95_v21 = vrot.slane %v55_v13, %v42_v2 }
  0x15   :  { %v99_v22 = vrot.slane %v59_v14, %v42_v2  ;;  %v103_v23 = vrot.slane %v63_v15, %v42_v2  ;;  %v107_v24 = vrot.slane %v67_v16, %v42_v2  ;;  %v111_v25 = vrot.slane %v71_v17, %v42_v2 }
  0x16   :  { %v120_v26 = vcombine.low %v83_v18, %v87_v19  ;;  %v121_v27 = vcombine.low %v91_v20, %v95_v21  ;;  %v165_v30 = vrot.slane %v461_v6, %v164_v4  ;;  %v169_v31 = vrot.slane %v461_v6, %v168_v5 }
  0x17   :  { %v122_v28 = vcombine.low %v99_v22, %v103_v23  ;;  %v123_v29 = vcombine.low %v107_v24, %v111_v25  ;;  %v173_v34 = vrot.slane %v463_v7, %v164_v4  ;;  %v177_v35 = vrot.slane %v463_v7, %v168_v5 }
  0x18   :  { %v128_v32 = vmul.f32 %v120_v26, %v461_v6  ;;  %v129_v33 = vmul.f32 %v121_v27, %v463_v7  ;;  %v181_v38 = vrot.slane %v465_v8, %v164_v4  ;;  %v185_v39 = vrot.slane %v465_v8, %v168_v5 }
  0x19   :  { %v130_v36 = vmul.f32 %v122_v28, %v465_v8  ;;  %v131_v37 = vmul.f32 %v123_v29, %v467_v9  ;;  %v189_v43 = vrot.slane %v467_v9, %v164_v4  ;;  %v193_v46 = vrot.slane %v467_v9, %v168_v5 }
  0x1a   :  { %v136_v40 = vcombine.high %v128_v32, %v128_v32  ;;  %v137_v41 = vcombine.high %v129_v33, %v129_v33  ;;  %v145_v42 = vsel %vm144_vm0, %v128_v32, 0.0  ;;  %v148_v44 = vsel %vm144_vm0, %v129_v33, 0.0 }
  0x1b   :  { %v138_v48 = vcombine.high %v130_v36, %v130_v36  ;;  %v205_v50 = vrot.slane %v165_v30, %v164_v4  ;;  %v209_v51 = vrot.slane %v169_v31, %v164_v4  ;;  %v139_v52 = vcombine.high %v131_v37, %v131_v37 }
  0x1c   :  { %v146_v49 = vsel %vm144_vm0, %v136_v40, 0.0  ;;  %v150_v54 = vsel %vm144_vm0, %v137_v41, 0.0  ;;  %v213_v55 = vrot.slane %v173_v34, %v164_v4  ;;  %v217_v56 = vrot.slane %v177_v35, %v164_v4 }
  0x1d   :  { %v147_v53 = vadd.f32 %v146_v49, %v145_v42  ;;  %v221_v57 = vrot.slane %v181_v38, %v164_v4  ;;  %v225_v58 = vrot.slane %v185_v39, %v164_v4  ;;  %v229_v59 = vrot.slane %v189_v43, %v164_v4 }
  0x1e   :  { %v152_v61 = vsel %vm144_vm0, %v130_v36, 0.0  ;;  %v233_v62 = vrot.slane %v193_v46, %v164_v4  ;;  %v242_v63 = vcombine.low %v205_v50, %v209_v51  ;;  %v154_v0 = vsel %vm144_vm0, %v138_v48, 0.0 }
  0x1f   :  { %v149_v60 = vadd.f32 %v148_v44, %v147_v53  ;;  %v156_v1 = vsel %vm144_vm0, %v131_v37, 0.0  ;;  %v243_v2 = vcombine.low %v213_v55, %v217_v56  ;;  %v244_v3 = vcombine.low %v221_v57, %v225_v58 }
  0x20   :  { %v158_v10 = vsel %vm144_vm0, %v139_v52, 0.0  ;;  %v245_v11 = vcombine.low %v229_v59, %v233_v62  ;;  %v250_v12 = vmul.f32 %v242_v63, %v461_v6  ;;  %v286_v15 = vrot.slane %v461_v6, %v285_v45 }
  0x21   :  { %v151_v5 = vadd.f32 %v150_v54, %v149_v60  ;;  %v251_v13 = vmul.f32 %v243_v2, %v463_v7  ;;  %v252_v14 = vmul.f32 %v244_v3, %v465_v8  ;;  %v290_v4 = vrot.slane %v461_v6, %v289_v47 }
  0x22   :  { %v258_v17 = vcombine.high %v250_v12, %v250_v12  ;;  %v266_v18 = vsel %vm144_vm0, %v250_v12, 0.0  ;;  %v294_v19 = vrot.slane %v463_v7, %v285_v45  ;;  %v298_v21 = vrot.slane %v463_v7, %v289_v47 }
  0x23   :  { %v153_v16 = vadd.f32 %v152_v61, %v151_v5  ;;  %v259_v20 = vcombine.high %v251_v13, %v251_v13  ;;  %v302_v22 = vrot.slane %v465_v8, %v285_v45  ;;  %v306_v23 = vrot.slane %v465_v8, %v289_v47 }
  0x24   :  { %v253_v25 = vmul.f32 %v245_v11, %v467_v9  ;;  %v267_v26 = vsel %vm144_vm0, %v258_v17, 0.0  ;;  %v269_v27 = vsel %vm144_vm0, %v251_v13, 0.0  ;;  %v260_v28 = vcombine.high %v252_v14, %v252_v14 }
  0x25   :  { %v155_v24 = vadd.f32 %v154_v0, %v153_v16  ;;  %v268_v29 = vadd.f32 %v267_v26, %v266_v18  ;;  %v273_v30 = vsel %vm144_vm0, %v252_v14, 0.0  ;;  %v310_v31 = vrot.slane %v467_v9, %v285_v45 }
  0x26   :  { %v271_v33 = vsel %vm144_vm0, %v259_v20, 0.0  ;;  %v314_v34 = vrot.slane %v467_v9, %v289_v47  ;;  %v326_v35 = vrot.slane %v286_v15, %v285_v45  ;;  %v330_v37 = vrot.slane %v290_v4, %v285_v45 }
  0x27   :  { %v157_v32 = vadd.f32 %v156_v1, %v155_v24  ;;  %v270_v36 = vadd.f32 %v269_v27, %v268_v29  ;;  %v334_v38 = vrot.slane %v294_v19, %v285_v45  ;;  %v338_v39 = vrot.slane %v298_v21, %v285_v45 }
  0x28   :  { %v342_v41 = vrot.slane %v302_v22, %v285_v45  ;;  %v346_v42 = vrot.slane %v306_v23, %v285_v45  ;;  %v350_v43 = vrot.slane %v310_v31, %v285_v45  ;;  %v354_v46 = vrot.slane %v314_v34, %v285_v45 }
  0x29   :  { %v159_v40 = vadd.f32 %v158_v10, %v157_v32  ;;  %v272_v44 = vadd.f32 %v271_v33, %v270_v36  ;;  %v363_v48 = vcombine.low %v326_v35, %v330_v37  ;;  %v364_v49 = vcombine.low %v334_v38, %v338_v39 }
  0x2a   :  { %v261_v50 = vcombine.high %v253_v25, %v253_v25  ;;  %v275_v51 = vsel %vm144_vm0, %v260_v28, 0.0  ;;  %v365_v52 = vcombine.low %v342_v41, %v346_v42  ;;  %v277_v55 = vsel %vm144_vm0, %v253_v25, 0.0 }
  0x2b   :  { %160 = vadd.xlane.f32.xlu0 %v159_v40  ;;  %v274_v53 = vadd.f32 %v273_v30, %v272_v44  ;;  %v371_v47 = vmul.f32 %v363_v48, %v461_v6  ;;  %v372_v54 = vmul.f32 %v364_v49, %v463_v7  ;;  %v366_v56 = vcombine.low %v350_v43, %v354_v46 }
  0x2c   :  { %v373_v58 = vmul.f32 %v365_v52, %v465_v8  ;;  %v279_v60 = vsel %vm144_vm0, %v261_v50, 0.0 }
  0x2d   :  { %v276_v57 = vadd.f32 %v275_v51, %v274_v53  ;;  %v379_v59 = vcombine.high %v371_v47, %v371_v47  ;;  %v380_v45 = vcombine.high %v372_v54, %v372_v54  ;;  %v387_v61 = vsel %vm144_vm0, %v371_v47, 0.0 }
  0x2e   :  { %v390_v0 = vsel %vm144_vm0, %v372_v54, 0.0  ;;  %v374_v7 = vmul.f32 %v366_v56, %v467_v9  ;;  %v381_v2 = vcombine.high %v373_v58, %v373_v58  ;;  %v394_v8 = vsel %vm144_vm0, %v373_v58, 0.0 }
  0x2f   :  { %v278_v62 = vadd.f32 %v277_v55, %v276_v57  ;;  %v388_v63 = vsel %vm144_vm0, %v379_v59, 0.0  ;;  %v392_v3 = vsel %vm144_vm0, %v380_v45, 0.0  ;;  %v447_v9 = vmov 0.0  }
  0x30   :  { %v389_v6 = vadd.f32 %v388_v63, %v387_v61  ;;  %v382_v11 = vcombine.high %v374_v7, %v374_v7  ;;  %v396_v12 = vsel %vm144_vm0, %v381_v2, 0.0  ;;  %v398_v14 = vsel %vm144_vm0, %v374_v7, 0.0  ;;  %31 = vst.msk [vmem:[#allocation2] sm:$0x7] %vm30_vm1, %v447_v9 }
  0x31   :  { %v280_v1 = vadd.f32 %v279_v60, %v278_v62 }
  0x32   :  { %v391_v5 = vadd.f32 %v390_v0, %v389_v6  ;;  %v400_v4 = vsel %vm144_vm0, %v382_v11, 0.0 }
  0x33   :  { %281 = vadd.xlane.f32.xlu0 %v280_v1 }
  0x34   :  { %v393_v10 = vadd.f32 %v392_v3, %v391_v5 }
  0x36   :  { %v395_v13 = vadd.f32 %v394_v8, %v393_v10 }
  0x37   :  { %v408_v21 = vld [vmem:[#allocation2] sm:$0x7] }
  0x38   :  { %v397_v15 = vadd.f32 %v396_v12, %v395_v13 }
  0x3a   :  { %v399_v16 = vadd.f32 %v398_v14, %v397_v15 }
  0x3c   :  { %v401_v17 = vadd.f32 %v400_v4, %v399_v16 }
  0x3e   :  { %402 = vadd.xlane.f32.xlu1 %v401_v17 }
  0xb4   :  { %v161_v18 = vpop.xlane.xlu0 %160 }
  0xbc   :  { %v282_v19 = vpop.xlane.xlu0 %281 }
  0xbd   :  { %v405_v20 = vsel %vm404_vm2, %v161_v18, %v282_v19 }
  0xc7   :  { %v403_v22 = vpop.xlane.xlu1 %402 }
  0xc8   :  { %v407_v23 = vsel %vm406_vm3, %v405_v20, %v403_v22 }
  0xc9   :  { %v409_v24 = vadd.f32 %v408_v21, %v407_v23 }
  0xcb   :  { %411 = vst.msk [vmem:[#allocation2] sm:$0x7] %vm30_vm1, %v409_v24 }
  0xd2   :  { %v415_v25 = vld [vmem:[#allocation2] sm:$0x7] }
  0xd3   :  { %416 = vst.msk [vmem:[%s533_s1] sm:$0x7] %vm30_vm1, %v415_v25 }
  0xd4   :  { %421 = vsyncpa [#allocation4], 1 }

</bundles_post_ra>
